<compile_context>
chip_gen: v6e
topology: v6e:2x2x1
jax: 0.10.0
libtpu: 0.0.40
codegen_flags: <defaults>
</compile_context>

<pallas_src>
import functools

import jax
import jax.numpy as jnp
from jax import lax
from jax.experimental import pallas as pl
from jax.experimental.pallas import tpu as pltpu


# ----------------------------------------------------------------------------
# Fused multi-layer multi-head attention kernel (one batch block per grid step).
# ----------------------------------------------------------------------------
def _mhmla_kernel(x_ref, wqkv_ref, bqkv_ref, wo_ref, bo_ref, o_ref, *,
                  num_layers, num_heads, head_dim, compute_dtype):
    Bt, S, _ = x_ref.shape
    H = head_dim
    nH = num_heads
    M = Bt * S
    scale = jnp.float32(1.0 / (H ** 0.5))

    # Additive causal mask (finite negative, built once, reused for every head
    # and every layer of this grid step).
    row = lax.broadcasted_iota(jnp.int32, (S, S), 0)
    col = lax.broadcasted_iota(jnp.int32, (S, S), 1)
    mask_bias = jnp.where(col > row, jnp.float32(-1e30), jnp.float32(0.0))[None]  # (1,S,S)

    x = x_ref[...].astype(jnp.float32)                      # (Bt, S, D)

    for l in range(num_layers):                             # static unroll (L small)
        d_in = x.shape[-1]
        x2 = x.reshape(M, d_in).astype(compute_dtype)       # fold batch into MXU M dim

        # One wide projection GEMM for all heads / q,k,v at once.
        qkv = jnp.dot(x2, wqkv_ref[l],
                      preferred_element_type=jnp.float32)   # (M, 3*nH*H) f32
        qkv = qkv + bqkv_ref[l]                             # bias in f32

        wo_l = wo_ref[l]                                    # (nH*H, H), compute_dtype
        out = jnp.zeros((M, H), jnp.float32)

        for h in range(nH):                                 # static unroll (nH small)
            q = qkv[:, h * H:(h + 1) * H].reshape(Bt, S, H).astype(compute_dtype)
            k = qkv[:, (nH + h) * H:(nH + h + 1) * H].reshape(Bt, S, H).astype(compute_dtype)
            v = qkv[:, (2 * nH + h) * H:(2 * nH + h + 1) * H].reshape(Bt, S, H).astype(compute_dtype)

            # Batched scores, contraction on the last dim (no explicit k.T).
            scores = jnp.einsum('bqh,bkh->bqk', q, k,
                                preferred_element_type=jnp.float32) * scale
            scores = scores + mask_bias                     # additive causal mask

            m = jnp.max(scores, axis=-1, keepdims=True)
            e = jnp.exp(scores - m)
            denom = jnp.sum(e, axis=-1, keepdims=True)
            attn = (e * pl.reciprocal(denom, approx=True)).astype(compute_dtype)

            ctx = jnp.einsum('bqk,bkh->bqh', attn, v,
                             preferred_element_type=jnp.float32)  # (Bt,S,H) f32

            # Head-concat + output projection fused as an accumulation.
            out = out + jnp.dot(ctx.reshape(M, H).astype(compute_dtype),
                                wo_l[h * H:(h + 1) * H, :],
                                preferred_element_type=jnp.float32)

        x = (out + bo_ref[l]).reshape(Bt, S, H)             # activation stays on-chip

    o_ref[...] = x.astype(o_ref.dtype)


# ----------------------------------------------------------------------------
# Wrapper: pack weights into the fused/stacked layout and launch one kernel.
# ----------------------------------------------------------------------------
def _pack_params(layer_params, compute_dtype):
    wqkv, bqkv, wo, bo = [], [], [], []
    for p in layer_params:
        n_heads = p["wq"].shape[0]

        def flat_w(w):   # (nH, D, H) -> (D, nH*H)
            return jnp.concatenate([w[h] for h in range(n_heads)], axis=1)

        def flat_b(b):   # (nH, 1, H) -> (1, nH*H)
            return jnp.concatenate([b[h] for h in range(n_heads)], axis=1)

        wqkv.append(jnp.concatenate(
            [flat_w(p["wq"]), flat_w(p["wk"]), flat_w(p["wv"])], axis=1))
        bqkv.append(jnp.concatenate(
            [flat_b(p["bq"]), flat_b(p["bk"]), flat_b(p["bv"])], axis=1))
        wo.append(p["wo"])
        bo.append(p["bo"])

    return {
        "wqkv": jnp.stack(wqkv).astype(compute_dtype),   # (L, D, 3*nH*H)
        "bqkv": jnp.stack(bqkv).astype(jnp.float32),     # (L, 1, 3*nH*H)
        "wo":   jnp.stack(wo).astype(compute_dtype),     # (L, nH*H, H)
        "bo":   jnp.stack(bo).astype(jnp.float32),       # (L, 1, H)
    }


def _choose_batch_block(batch, seq):
    """Rows per grid step: aim for Bt*S >= ~128 (MXU M occupancy) while keeping
    at least 2 parallel grid steps when possible (v7x has 2 TensorCores)."""
    target = max(1, -(-128 // seq))
    if batch >= 2:
        target = max(1, min(target, batch // 2))
    bt = 1
    for d in range(1, batch + 1):
        if batch % d == 0 and d <= target:
            bt = d
    return bt


def multi_head_multi_layer_attention(x, layer_params, *, hidden_size,
                                     compute_dtype=jnp.bfloat16):
    B, S, D = x.shape
    num_layers = len(layer_params)
    num_heads = layer_params[0]["wq"].shape[0]
    if num_layers > 1:
        assert D == hidden_size, "stacked layers require input_size == hidden_size"

    packed = _pack_params(layer_params, compute_dtype)
    wqkv, bqkv, wo, bo = packed["wqkv"], packed["bqkv"], packed["wo"], packed["bo"]

    Bt = _choose_batch_block(B, S)
    grid = (B // Bt,)

    kernel = functools.partial(
        _mhmla_kernel, num_layers=num_layers, num_heads=num_heads,
        head_dim=hidden_size, compute_dtype=compute_dtype)

    def const_spec(a):
        shp = a.shape
        # Constant index_map: loaded into VMEM once, never re-DMA'd across the
        # grid.  TODO(synk): could add pipeline_mode=pl.Buffered(1) to drop the
        # second buffer for larger models (VMEM headroom on v7x).
        return pl.BlockSpec(shp, lambda b: (0,) * len(shp))

    return pl.pallas_call(
        kernel,
        out_shape=jax.ShapeDtypeStruct((B, S, hidden_size), x.dtype),
        grid_spec=pltpu.PrefetchScalarGridSpec(
            num_scalar_prefetch=0,
            grid=grid,
            in_specs=[
                pl.BlockSpec((Bt, S, D), lambda b: (b, 0, 0)),
                const_spec(wqkv), const_spec(bqkv),
                const_spec(wo), const_spec(bo),
            ],
            out_specs=pl.BlockSpec((Bt, S, hidden_size), lambda b: (b, 0, 0)),
        ),
        compiler_params=pltpu.CompilerParams(
            dimension_semantics=("parallel",)),
    )(x, wqkv, bqkv, wo, bo)


# ----------------------------------------------------------------------------
# Deterministic parameter init (mimics nn.Linear default init + spectral_norm).
# ----------------------------------------------------------------------------
def init_params(key, input_size, hidden_size, num_layers, num_heads, if_lip=True):
    layers = []
    for _ in range(num_layers):
        stacks = {name: [] for name in ("wq", "bq", "wk", "bk", "wv", "bv")}
        for _h in range(num_heads):
            for wname, bname in (("wq", "bq"), ("wk", "bk"), ("wv", "bv")):
                key, k1, k2 = jax.random.split(key, 3)
                bound = 1.0 / (input_size ** 0.5)
                w = jax.random.uniform(k1, (hidden_size, input_size),
                                       jnp.float32, -bound, bound)
                b = jax.random.uniform(k2, (hidden_size,),
                                       jnp.float32, -bound, bound)
                if if_lip:
                    w = w / jnp.linalg.norm(w, ord=2)
                stacks[wname].append(w.T)                        # (D, H)
                stacks[bname].append(b.reshape(1, hidden_size))  # (1, H)

        # Output projection: the PyTorch forward creates a *fresh* nn.Linear
        # (no spectral norm) each call; here it gets deterministic weights.
        key, k1, k2 = jax.random.split(key, 3)
        fan_in = hidden_size * num_heads
        bound = 1.0 / (fan_in ** 0.5)
        wo = jax.random.uniform(k1, (hidden_size, fan_in),
                                jnp.float32, -bound, bound).T    # (nH*H, H)
        bo = jax.random.uniform(k2, (hidden_size,),
                                jnp.float32, -bound, bound).reshape(1, hidden_size)

        layers.append({
            "wq": jnp.stack(stacks["wq"]), "bq": jnp.stack(stacks["bq"]),
            "wk": jnp.stack(stacks["wk"]), "bk": jnp.stack(stacks["bk"]),
            "wv": jnp.stack(stacks["wv"]), "bv": jnp.stack(stacks["bv"]),
            "wo": wo, "bo": bo,
        })
    return layers


# ----------------------------------------------------------------------------
# Pure-JAX reference (for correctness check).
# ----------------------------------------------------------------------------
def reference(x, layer_params):
    for p in layer_params:
        S = x.shape[1]
        mask = jnp.triu(jnp.ones((S, S)), k=1) == 1
        heads = []
        for h in range(p["wq"].shape[0]):
            q = x @ p["wq"][h] + p["bq"][h]
            k = x @ p["wk"][h] + p["bk"][h]
            v = x @ p["wv"][h] + p["bv"][h]
            scores = jnp.einsum("bsh,bth->bst", q, k) / (q.shape[-1] ** 0.5)
            scores = jnp.where(mask, -jnp.inf, scores)
            attn = jax.nn.softmax(scores, axis=-1)
            heads.append(jnp.einsum("bst,bth->bsh", attn, v))
        concat = jnp.concatenate(heads, axis=-1)
        x = concat @ p["wo"] + p["bo"][0]
    return x


if __name__ == "__main__":
    B, S, D, H = 2, 8, 32, 32          # input_size == hidden_size (required for num_layers > 1)
    num_layers, num_heads = 2, 2

    key = jax.random.PRNGKey(0)
    key, xkey = jax.random.split(key)
    x = jax.random.normal(xkey, (B, S, D), jnp.float32)

    layer_params = init_params(key, D, H, num_layers, num_heads, if_lip=True)
    ref = reference(x, layer_params)

    # f32 MXU path (tight tolerance).
    out_f32 = multi_head_multi_layer_attention(
        x, layer_params, hidden_size=H, compute_dtype=jnp.float32)
    out_f32 = jax.block_until_ready(out_f32)
    assert out_f32.shape == (B, S, H)
    assert jnp.allclose(out_f32, ref, atol=1e-2, rtol=1e-2), \
        float(jnp.max(jnp.abs(out_f32 - ref)))

    # bf16 MXU path (peak-throughput configuration, looser tolerance).
    out_bf16 = multi_head_multi_layer_attention(
        x, layer_params, hidden_size=H, compute_dtype=jnp.bfloat16)
    out_bf16 = jax.block_until_ready(out_bf16)
    assert out_bf16.shape == (B, S, H)
    assert jnp.allclose(out_bf16, ref, atol=5e-2, rtol=5e-2), \
        float(jnp.max(jnp.abs(out_bf16 - ref)))

    print("KERNEL_OK")
</pallas_src>

<mosaic_0001>
module attributes {stable_mosaic.version = 11 : i64} {
  func.func @_mhmla_kernel(%arg0: i32, %arg1: memref<1x8x32xf32, #tpu.memory_space<vmem>>, %arg2: memref<2x32x192xf32, #tpu.memory_space<vmem>>, %arg3: memref<2x1x192xf32, #tpu.memory_space<vmem>>, %arg4: memref<2x64x32xf32, #tpu.memory_space<vmem>>, %arg5: memref<2x1x32xf32, #tpu.memory_space<vmem>>, %arg6: memref<1x8x32xf32, #tpu.memory_space<vmem>>) attributes {dimension_semantics = [#tpu.dimension_semantics<parallel>], iteration_bounds = array<i64: 2>, scalar_prefetch = 0 : i64, scratch_operands = 0 : i64, tpu.core_type = #tpu.core_type<tc>, window_params = [{transform_indices = @transform_0, window_bounds = array<i64: 1, 8, 32>}, {pipeline_mode = #tpu.pipeline_mode<synchronous>, transform_indices = @transform_1, window_bounds = array<i64: 2, 32, 192>}, {pipeline_mode = #tpu.pipeline_mode<synchronous>, transform_indices = @transform_2, window_bounds = array<i64: 2, 1, 192>}, {pipeline_mode = #tpu.pipeline_mode<synchronous>, transform_indices = @transform_3, window_bounds = array<i64: 2, 64, 32>}, {pipeline_mode = #tpu.pipeline_mode<synchronous>, transform_indices = @transform_4, window_bounds = array<i64: 2, 1, 32>}, {transform_indices = @transform_5, window_bounds = array<i64: 1, 8, 32>}]} {
    %0 = tpu.iota {dimensions = array<i32: 0>} : vector<8x8xi32>
    %1 = tpu.iota {dimensions = array<i32: 1>} : vector<8x8xi32>
    %2 = arith.cmpi sgt, %1, %0 : vector<8x8xi32>
    %cst = arith.constant -1.000000e+30 : f32
    %cst_0 = arith.constant 0.000000e+00 : f32
    %3 = vector.broadcast %cst : f32 to vector<8x8xf32>
    %4 = vector.broadcast %cst_0 : f32 to vector<8x8xf32>
    %5 = arith.select %2, %3, %4 : vector<8x8xi1>, vector<8x8xf32>
    %6 = vector.shape_cast %5 : vector<8x8xf32> to vector<1x8x8xf32>
    %c0 = arith.constant 0 : index
    %c0_1 = arith.constant 0 : index
    %c0_2 = arith.constant 0 : index
    %7 = vector.load %arg1[%c0, %c0_1, %c0_2] : memref<1x8x32xf32, #tpu.memory_space<vmem>>, vector<1x8x32xf32>
    %8 = vector.shape_cast %7 : vector<1x8x32xf32> to vector<8x32xf32>
    %c0_3 = arith.constant 0 : index
    %c0_4 = arith.constant 0 : index
    %c0_5 = arith.constant 0 : index
    %9 = vector.load %arg2[%c0_3, %c0_4, %c0_5] : memref<2x32x192xf32, #tpu.memory_space<vmem>>, vector<1x32x192xf32>
    %10 = vector.shape_cast %9 : vector<1x32x192xf32> to vector<32x192xf32>
    %cst_6 = arith.constant dense<0.000000e+00> : vector<8x192xf32>
    %11 = tpu.matmul %8, %10, %cst_6 {dimension_numbers = #tpu.dot_dimension_numbers<[1], [0], [0], [1], [0, 0, 1, 1], [], []>} : vector<8x32xf32>, vector<32x192xf32>, vector<8x192xf32> -> vector<8x192xf32>
    %c0_7 = arith.constant 0 : index
    %c0_8 = arith.constant 0 : index
    %c0_9 = arith.constant 0 : index
    %12 = vector.load %arg3[%c0_7, %c0_8, %c0_9] : memref<2x1x192xf32, #tpu.memory_space<vmem>>, vector<1x1x192xf32>
    %13 = vector.shape_cast %12 : vector<1x1x192xf32> to vector<1x192xf32>
    %14 = vector.broadcast %13 : vector<1x192xf32> to vector<8x192xf32>
    %15 = arith.addf %11, %14 : vector<8x192xf32>
    %c0_10 = arith.constant 0 : index
    %c0_11 = arith.constant 0 : index
    %c0_12 = arith.constant 0 : index
    %16 = vector.load %arg4[%c0_10, %c0_11, %c0_12] : memref<2x64x32xf32, #tpu.memory_space<vmem>>, vector<1x64x32xf32>
    %17 = vector.shape_cast %16 : vector<1x64x32xf32> to vector<64x32xf32>
    %cst_13 = arith.constant 0.000000e+00 : f32
    %18 = vector.broadcast %cst_13 : f32 to vector<8x32xf32>
    %19 = vector.extract_strided_slice %15 {offsets = [0, 0], sizes = [8, 32], strides = [1, 1]} : vector<8x192xf32> to vector<8x32xf32>
    %20 = vector.shape_cast %19 : vector<8x32xf32> to vector<1x8x32xf32>
    %21 = vector.extract_strided_slice %15 {offsets = [0, 64], sizes = [8, 32], strides = [1, 1]} : vector<8x192xf32> to vector<8x32xf32>
    %22 = vector.shape_cast %21 : vector<8x32xf32> to vector<1x8x32xf32>
    %23 = vector.extract_strided_slice %15 {offsets = [0, 128], sizes = [8, 32], strides = [1, 1]} : vector<8x192xf32> to vector<8x32xf32>
    %24 = vector.shape_cast %23 : vector<8x32xf32> to vector<1x8x32xf32>
    "tpu.trace_start"() <{level = 10 : i32, message = "bqh,bkh->bqk"}> : () -> ()
    %cst_14 = arith.constant dense<0.000000e+00> : vector<1x8x8xf32>
    %25 = tpu.matmul %20, %22, %cst_14 {dimension_numbers = #tpu.dot_dimension_numbers<[2], [2], [1], [1], [0, 0, 0, 1, 1, 1], [0], [0]>} : vector<1x8x32xf32>, vector<1x8x32xf32>, vector<1x8x8xf32> -> vector<1x8x8xf32>
    "tpu.trace_stop"() : () -> ()
    %cst_15 = arith.constant 0.176776692 : f32
    %26 = vector.broadcast %cst_15 : f32 to vector<1x8x8xf32>
    %27 = arith.mulf %25, %26 : vector<1x8x8xf32>
    %28 = arith.addf %27, %6 : vector<1x8x8xf32>
    %cst_16 = arith.constant dense<0xFF800000> : vector<1x8xf32>
    %29 = vector.multi_reduction <maximumf>, %28, %cst_16 [2] : vector<1x8x8xf32> to vector<1x8xf32>
    %30 = vector.shape_cast %29 : vector<1x8xf32> to vector<1x8x1xf32>
    %31 = vector.broadcast %30 : vector<1x8x1xf32> to vector<1x8x8xf32>
    %32 = arith.subf %28, %31 : vector<1x8x8xf32>
    %33 = math.exp %32 : vector<1x8x8xf32>
    %cst_17 = arith.constant dense<0.000000e+00> : vector<1x8xf32>
    %34 = vector.multi_reduction <add>, %33, %cst_17 [2] : vector<1x8x8xf32> to vector<1x8xf32>
    %35 = vector.shape_cast %34 : vector<1x8xf32> to vector<1x8x1xf32>
    %36 = tpu.reciprocal %35 {approx = true} : vector<1x8x1xf32> -> vector<1x8x1xf32>
    %37 = vector.broadcast %36 : vector<1x8x1xf32> to vector<1x8x8xf32>
    %38 = arith.mulf %33, %37 : vector<1x8x8xf32>
    "tpu.trace_start"() <{level = 10 : i32, message = "bqk,bkh->bqh"}> : () -> ()
    %cst_18 = arith.constant dense<0.000000e+00> : vector<1x8x32xf32>
    %39 = tpu.matmul %38, %24, %cst_18 {dimension_numbers = #tpu.dot_dimension_numbers<[2], [1], [1], [2], [0, 0, 0, 1, 1, 2], [0], [0]>} : vector<1x8x8xf32>, vector<1x8x32xf32>, vector<1x8x32xf32> -> vector<1x8x32xf32>
    "tpu.trace_stop"() : () -> ()
    %40 = vector.shape_cast %39 : vector<1x8x32xf32> to vector<8x32xf32>
    %41 = vector.extract_strided_slice %17 {offsets = [0, 0], sizes = [32, 32], strides = [1, 1]} : vector<64x32xf32> to vector<32x32xf32>
    %cst_19 = arith.constant dense<0.000000e+00> : vector<8x32xf32>
    %42 = tpu.matmul %40, %41, %cst_19 {dimension_numbers = #tpu.dot_dimension_numbers<[1], [0], [0], [1], [0, 0, 1, 1], [], []>} : vector<8x32xf32>, vector<32x32xf32>, vector<8x32xf32> -> vector<8x32xf32>
    %43 = arith.addf %18, %42 : vector<8x32xf32>
    %44 = vector.extract_strided_slice %15 {offsets = [0, 32], sizes = [8, 32], strides = [1, 1]} : vector<8x192xf32> to vector<8x32xf32>
    %45 = vector.shape_cast %44 : vector<8x32xf32> to vector<1x8x32xf32>
    %46 = vector.extract_strided_slice %15 {offsets = [0, 96], sizes = [8, 32], strides = [1, 1]} : vector<8x192xf32> to vector<8x32xf32>
    %47 = vector.shape_cast %46 : vector<8x32xf32> to vector<1x8x32xf32>
    %48 = vector.extract_strided_slice %15 {offsets = [0, 160], sizes = [8, 32], strides = [1, 1]} : vector<8x192xf32> to vector<8x32xf32>
    %49 = vector.shape_cast %48 : vector<8x32xf32> to vector<1x8x32xf32>
    "tpu.trace_start"() <{level = 10 : i32, message = "bqh,bkh->bqk"}> : () -> ()
    %cst_20 = arith.constant dense<0.000000e+00> : vector<1x8x8xf32>
    %50 = tpu.matmul %45, %47, %cst_20 {dimension_numbers = #tpu.dot_dimension_numbers<[2], [2], [1], [1], [0, 0, 0, 1, 1, 1], [0], [0]>} : vector<1x8x32xf32>, vector<1x8x32xf32>, vector<1x8x8xf32> -> vector<1x8x8xf32>
    "tpu.trace_stop"() : () -> ()
    %cst_21 = arith.constant 0.176776692 : f32
    %51 = vector.broadcast %cst_21 : f32 to vector<1x8x8xf32>
    %52 = arith.mulf %50, %51 : vector<1x8x8xf32>
    %53 = arith.addf %52, %6 : vector<1x8x8xf32>
    %cst_22 = arith.constant dense<0xFF800000> : vector<1x8xf32>
    %54 = vector.multi_reduction <maximumf>, %53, %cst_22 [2] : vector<1x8x8xf32> to vector<1x8xf32>
    %55 = vector.shape_cast %54 : vector<1x8xf32> to vector<1x8x1xf32>
    %56 = vector.broadcast %55 : vector<1x8x1xf32> to vector<1x8x8xf32>
    %57 = arith.subf %53, %56 : vector<1x8x8xf32>
    %58 = math.exp %57 : vector<1x8x8xf32>
    %cst_23 = arith.constant dense<0.000000e+00> : vector<1x8xf32>
    %59 = vector.multi_reduction <add>, %58, %cst_23 [2] : vector<1x8x8xf32> to vector<1x8xf32>
    %60 = vector.shape_cast %59 : vector<1x8xf32> to vector<1x8x1xf32>
    %61 = tpu.reciprocal %60 {approx = true} : vector<1x8x1xf32> -> vector<1x8x1xf32>
    %62 = vector.broadcast %61 : vector<1x8x1xf32> to vector<1x8x8xf32>
    %63 = arith.mulf %58, %62 : vector<1x8x8xf32>
    "tpu.trace_start"() <{level = 10 : i32, message = "bqk,bkh->bqh"}> : () -> ()
    %cst_24 = arith.constant dense<0.000000e+00> : vector<1x8x32xf32>
    %64 = tpu.matmul %63, %49, %cst_24 {dimension_numbers = #tpu.dot_dimension_numbers<[2], [1], [1], [2], [0, 0, 0, 1, 1, 2], [0], [0]>} : vector<1x8x8xf32>, vector<1x8x32xf32>, vector<1x8x32xf32> -> vector<1x8x32xf32>
    "tpu.trace_stop"() : () -> ()
    %65 = vector.shape_cast %64 : vector<1x8x32xf32> to vector<8x32xf32>
    %66 = vector.extract_strided_slice %17 {offsets = [32, 0], sizes = [32, 32], strides = [1, 1]} : vector<64x32xf32> to vector<32x32xf32>
    %cst_25 = arith.constant dense<0.000000e+00> : vector<8x32xf32>
    %67 = tpu.matmul %65, %66, %cst_25 {dimension_numbers = #tpu.dot_dimension_numbers<[1], [0], [0], [1], [0, 0, 1, 1], [], []>} : vector<8x32xf32>, vector<32x32xf32>, vector<8x32xf32> -> vector<8x32xf32>
    %68 = arith.addf %43, %67 : vector<8x32xf32>
    %c0_26 = arith.constant 0 : index
    %c0_27 = arith.constant 0 : index
    %c0_28 = arith.constant 0 : index
    %69 = vector.load %arg5[%c0_26, %c0_27, %c0_28] : memref<2x1x32xf32, #tpu.memory_space<vmem>>, vector<1x1x32xf32>
    %70 = vector.shape_cast %69 : vector<1x1x32xf32> to vector<1x32xf32>
    %71 = vector.broadcast %70 : vector<1x32xf32> to vector<8x32xf32>
    %72 = arith.addf %68, %71 : vector<8x32xf32>
    %73 = vector.shape_cast %72 : vector<8x32xf32> to vector<1x8x32xf32>
    %74 = vector.shape_cast %73 : vector<1x8x32xf32> to vector<8x32xf32>
    %c1 = arith.constant 1 : index
    %c0_29 = arith.constant 0 : index
    %c0_30 = arith.constant 0 : index
    %75 = vector.load %arg2[%c1, %c0_29, %c0_30] : memref<2x32x192xf32, #tpu.memory_space<vmem>>, vector<1x32x192xf32>
    %76 = vector.shape_cast %75 : vector<1x32x192xf32> to vector<32x192xf32>
    %cst_31 = arith.constant dense<0.000000e+00> : vector<8x192xf32>
    %77 = tpu.matmul %74, %76, %cst_31 {dimension_numbers = #tpu.dot_dimension_numbers<[1], [0], [0], [1], [0, 0, 1, 1], [], []>} : vector<8x32xf32>, vector<32x192xf32>, vector<8x192xf32> -> vector<8x192xf32>
    %c1_32 = arith.constant 1 : index
    %c0_33 = arith.constant 0 : index
    %c0_34 = arith.constant 0 : index
    %78 = vector.load %arg3[%c1_32, %c0_33, %c0_34] : memref<2x1x192xf32, #tpu.memory_space<vmem>>, vector<1x1x192xf32>
    %79 = vector.shape_cast %78 : vector<1x1x192xf32> to vector<1x192xf32>
    %80 = vector.broadcast %79 : vector<1x192xf32> to vector<8x192xf32>
    %81 = arith.addf %77, %80 : vector<8x192xf32>
    %c1_35 = arith.constant 1 : index
    %c0_36 = arith.constant 0 : index
    %c0_37 = arith.constant 0 : index
    %82 = vector.load %arg4[%c1_35, %c0_36, %c0_37] : memref<2x64x32xf32, #tpu.memory_space<vmem>>, vector<1x64x32xf32>
    %83 = vector.shape_cast %82 : vector<1x64x32xf32> to vector<64x32xf32>
    %cst_38 = arith.constant 0.000000e+00 : f32
    %84 = vector.broadcast %cst_38 : f32 to vector<8x32xf32>
    %85 = vector.extract_strided_slice %81 {offsets = [0, 0], sizes = [8, 32], strides = [1, 1]} : vector<8x192xf32> to vector<8x32xf32>
    %86 = vector.shape_cast %85 : vector<8x32xf32> to vector<1x8x32xf32>
    %87 = vector.extract_strided_slice %81 {offsets = [0, 64], sizes = [8, 32], strides = [1, 1]} : vector<8x192xf32> to vector<8x32xf32>
    %88 = vector.shape_cast %87 : vector<8x32xf32> to vector<1x8x32xf32>
    %89 = vector.extract_strided_slice %81 {offsets = [0, 128], sizes = [8, 32], strides = [1, 1]} : vector<8x192xf32> to vector<8x32xf32>
    %90 = vector.shape_cast %89 : vector<8x32xf32> to vector<1x8x32xf32>
    "tpu.trace_start"() <{level = 10 : i32, message = "bqh,bkh->bqk"}> : () -> ()
    %cst_39 = arith.constant dense<0.000000e+00> : vector<1x8x8xf32>
    %91 = tpu.matmul %86, %88, %cst_39 {dimension_numbers = #tpu.dot_dimension_numbers<[2], [2], [1], [1], [0, 0, 0, 1, 1, 1], [0], [0]>} : vector<1x8x32xf32>, vector<1x8x32xf32>, vector<1x8x8xf32> -> vector<1x8x8xf32>
    "tpu.trace_stop"() : () -> ()
    %cst_40 = arith.constant 0.176776692 : f32
    %92 = vector.broadcast %cst_40 : f32 to vector<1x8x8xf32>
    %93 = arith.mulf %91, %92 : vector<1x8x8xf32>
    %94 = arith.addf %93, %6 : vector<1x8x8xf32>
    %cst_41 = arith.constant dense<0xFF800000> : vector<1x8xf32>
    %95 = vector.multi_reduction <maximumf>, %94, %cst_41 [2] : vector<1x8x8xf32> to vector<1x8xf32>
    %96 = vector.shape_cast %95 : vector<1x8xf32> to vector<1x8x1xf32>
    %97 = vector.broadcast %96 : vector<1x8x1xf32> to vector<1x8x8xf32>
    %98 = arith.subf %94, %97 : vector<1x8x8xf32>
    %99 = math.exp %98 : vector<1x8x8xf32>
    %cst_42 = arith.constant dense<0.000000e+00> : vector<1x8xf32>
    %100 = vector.multi_reduction <add>, %99, %cst_42 [2] : vector<1x8x8xf32> to vector<1x8xf32>
    %101 = vector.shape_cast %100 : vector<1x8xf32> to vector<1x8x1xf32>
    %102 = tpu.reciprocal %101 {approx = true} : vector<1x8x1xf32> -> vector<1x8x1xf32>
    %103 = vector.broadcast %102 : vector<1x8x1xf32> to vector<1x8x8xf32>
    %104 = arith.mulf %99, %103 : vector<1x8x8xf32>
    "tpu.trace_start"() <{level = 10 : i32, message = "bqk,bkh->bqh"}> : () -> ()
    %cst_43 = arith.constant dense<0.000000e+00> : vector<1x8x32xf32>
    %105 = tpu.matmul %104, %90, %cst_43 {dimension_numbers = #tpu.dot_dimension_numbers<[2], [1], [1], [2], [0, 0, 0, 1, 1, 2], [0], [0]>} : vector<1x8x8xf32>, vector<1x8x32xf32>, vector<1x8x32xf32> -> vector<1x8x32xf32>
    "tpu.trace_stop"() : () -> ()
    %106 = vector.shape_cast %105 : vector<1x8x32xf32> to vector<8x32xf32>
    %107 = vector.extract_strided_slice %83 {offsets = [0, 0], sizes = [32, 32], strides = [1, 1]} : vector<64x32xf32> to vector<32x32xf32>
    %cst_44 = arith.constant dense<0.000000e+00> : vector<8x32xf32>
    %108 = tpu.matmul %106, %107, %cst_44 {dimension_numbers = #tpu.dot_dimension_numbers<[1], [0], [0], [1], [0, 0, 1, 1], [], []>} : vector<8x32xf32>, vector<32x32xf32>, vector<8x32xf32> -> vector<8x32xf32>
    %109 = arith.addf %84, %108 : vector<8x32xf32>
    %110 = vector.extract_strided_slice %81 {offsets = [0, 32], sizes = [8, 32], strides = [1, 1]} : vector<8x192xf32> to vector<8x32xf32>
    %111 = vector.shape_cast %110 : vector<8x32xf32> to vector<1x8x32xf32>
    %112 = vector.extract_strided_slice %81 {offsets = [0, 96], sizes = [8, 32], strides = [1, 1]} : vector<8x192xf32> to vector<8x32xf32>
    %113 = vector.shape_cast %112 : vector<8x32xf32> to vector<1x8x32xf32>
    %114 = vector.extract_strided_slice %81 {offsets = [0, 160], sizes = [8, 32], strides = [1, 1]} : vector<8x192xf32> to vector<8x32xf32>
    %115 = vector.shape_cast %114 : vector<8x32xf32> to vector<1x8x32xf32>
    "tpu.trace_start"() <{level = 10 : i32, message = "bqh,bkh->bqk"}> : () -> ()
    %cst_45 = arith.constant dense<0.000000e+00> : vector<1x8x8xf32>
    %116 = tpu.matmul %111, %113, %cst_45 {dimension_numbers = #tpu.dot_dimension_numbers<[2], [2], [1], [1], [0, 0, 0, 1, 1, 1], [0], [0]>} : vector<1x8x32xf32>, vector<1x8x32xf32>, vector<1x8x8xf32> -> vector<1x8x8xf32>
    "tpu.trace_stop"() : () -> ()
    %cst_46 = arith.constant 0.176776692 : f32
    %117 = vector.broadcast %cst_46 : f32 to vector<1x8x8xf32>
    %118 = arith.mulf %116, %117 : vector<1x8x8xf32>
    %119 = arith.addf %118, %6 : vector<1x8x8xf32>
    %cst_47 = arith.constant dense<0xFF800000> : vector<1x8xf32>
    %120 = vector.multi_reduction <maximumf>, %119, %cst_47 [2] : vector<1x8x8xf32> to vector<1x8xf32>
    %121 = vector.shape_cast %120 : vector<1x8xf32> to vector<1x8x1xf32>
    %122 = vector.broadcast %121 : vector<1x8x1xf32> to vector<1x8x8xf32>
    %123 = arith.subf %119, %122 : vector<1x8x8xf32>
    %124 = math.exp %123 : vector<1x8x8xf32>
    %cst_48 = arith.constant dense<0.000000e+00> : vector<1x8xf32>
    %125 = vector.multi_reduction <add>, %124, %cst_48 [2] : vector<1x8x8xf32> to vector<1x8xf32>
    %126 = vector.shape_cast %125 : vector<1x8xf32> to vector<1x8x1xf32>
    %127 = tpu.reciprocal %126 {approx = true} : vector<1x8x1xf32> -> vector<1x8x1xf32>
    %128 = vector.broadcast %127 : vector<1x8x1xf32> to vector<1x8x8xf32>
    %129 = arith.mulf %124, %128 : vector<1x8x8xf32>
    "tpu.trace_start"() <{level = 10 : i32, message = "bqk,bkh->bqh"}> : () -> ()
    %cst_49 = arith.constant dense<0.000000e+00> : vector<1x8x32xf32>
    %130 = tpu.matmul %129, %115, %cst_49 {dimension_numbers = #tpu.dot_dimension_numbers<[2], [1], [1], [2], [0, 0, 0, 1, 1, 2], [0], [0]>} : vector<1x8x8xf32>, vector<1x8x32xf32>, vector<1x8x32xf32> -> vector<1x8x32xf32>
    "tpu.trace_stop"() : () -> ()
    %131 = vector.shape_cast %130 : vector<1x8x32xf32> to vector<8x32xf32>
    %132 = vector.extract_strided_slice %83 {offsets = [32, 0], sizes = [32, 32], strides = [1, 1]} : vector<64x32xf32> to vector<32x32xf32>
    %cst_50 = arith.constant dense<0.000000e+00> : vector<8x32xf32>
    %133 = tpu.matmul %131, %132, %cst_50 {dimension_numbers = #tpu.dot_dimension_numbers<[1], [0], [0], [1], [0, 0, 1, 1], [], []>} : vector<8x32xf32>, vector<32x32xf32>, vector<8x32xf32> -> vector<8x32xf32>
    %134 = arith.addf %109, %133 : vector<8x32xf32>
    %c1_51 = arith.constant 1 : index
    %c0_52 = arith.constant 0 : index
    %c0_53 = arith.constant 0 : index
    %135 = vector.load %arg5[%c1_51, %c0_52, %c0_53] : memref<2x1x32xf32, #tpu.memory_space<vmem>>, vector<1x1x32xf32>
    %136 = vector.shape_cast %135 : vector<1x1x32xf32> to vector<1x32xf32>
    %137 = vector.broadcast %136 : vector<1x32xf32> to vector<8x32xf32>
    %138 = arith.addf %134, %137 : vector<8x32xf32>
    %139 = vector.shape_cast %138 : vector<8x32xf32> to vector<1x8x32xf32>
    %c0_54 = arith.constant 0 : index
    %c0_55 = arith.constant 0 : index
    %c0_56 = arith.constant 0 : index
    %140 = vector.load %arg6[%c0_54, %c0_55, %c0_56] : memref<1x8x32xf32, #tpu.memory_space<vmem>>, vector<1x8x32xf32>
    tpu.vector_store %arg6[%c0_54, %c0_55, %c0_56], %139 {strides = array<i32>} : memref<1x8x32xf32, #tpu.memory_space<vmem>>, vector<1x8x32xf32>,
    return
  }
  func.func @transform_0(%arg0: i32) -> (i32, i32, i32) {
    %c0_i32 = arith.constant 0 : i32
    %c0_i32_0 = arith.constant 0 : i32
    %c0_i32_1 = arith.constant 0 : i32
    return %arg0, %c0_i32, %c0_i32_0 : i32, i32, i32
  }
  func.func @transform_1(%arg0: i32) -> (i32, i32, i32) {
    %c0_i32 = arith.constant 0 : i32
    %c0_i32_0 = arith.constant 0 : i32
    %c0_i32_1 = arith.constant 0 : i32
    %c0_i32_2 = arith.constant 0 : i32
    return %c0_i32, %c0_i32_0, %c0_i32_1 : i32, i32, i32
  }
  func.func @transform_2(%arg0: i32) -> (i32, i32, i32) {
    %c0_i32 = arith.constant 0 : i32
    %c0_i32_0 = arith.constant 0 : i32
    %c0_i32_1 = arith.constant 0 : i32
    %c0_i32_2 = arith.constant 0 : i32
    return %c0_i32, %c0_i32_0, %c0_i32_1 : i32, i32, i32
  }
  func.func @transform_3(%arg0: i32) -> (i32, i32, i32) {
    %c0_i32 = arith.constant 0 : i32
    %c0_i32_0 = arith.constant 0 : i32
    %c0_i32_1 = arith.constant 0 : i32
    %c0_i32_2 = arith.constant 0 : i32
    return %c0_i32, %c0_i32_0, %c0_i32_1 : i32, i32, i32
  }
  func.func @transform_4(%arg0: i32) -> (i32, i32, i32) {
    %c0_i32 = arith.constant 0 : i32
    %c0_i32_0 = arith.constant 0 : i32
    %c0_i32_1 = arith.constant 0 : i32
    %c0_i32_2 = arith.constant 0 : i32
    return %c0_i32, %c0_i32_0, %c0_i32_1 : i32, i32, i32
  }
  func.func @transform_5(%arg0: i32) -> (i32, i32, i32) {
    %c0_i32 = arith.constant 0 : i32
    %c0_i32_0 = arith.constant 0 : i32
    %c0_i32_1 = arith.constant 0 : i32
    return %arg0, %c0_i32, %c0_i32_0 : i32, i32, i32
  }
}

</mosaic_0001>

<bundles_post_ra>
// kernel: tpu_custom_call.1
= control target key start
LH: loop header
LB: loop body
LE: loop exit
PB: predicated region body
PF: predicated region fallthrough
CT: control target
= control target key end

     0   :  { %10 = vsyncpa [#allocation3], 0  ;;  %s2107_s0 = inlined_call_operand.vmem [shape: f32[2,8,32], index: 0, kind: input, shape index: {}]   ;;  %s2108_s1 = inlined_call_operand.vmem [shape: f32[2,32,192], index: 1, kind: input, shape index: {}]   ;;  %s2109_s2 = inlined_call_operand.vmem [shape: f32[2,1,192], index: 2, kind: input, shape index: {}]   ;;  %s2110_s3 = inlined_call_operand.vmem [shape: f32[2,64,32], index: 3, kind: input, shape index: {}]   ;;  %s2111_s4 = inlined_call_operand.vmem [shape: f32[2,1,32], index: 4, kind: input, shape index: {}]   ;;  %s2112_s5 = inlined_call_operand.hbm [shape: f32[2,8,32], index: 5, kind: output, shape index: {}]  }
   0x1   :  { %12 = vsyncpa [#allocation3 + $0x1], 0  ;;  %s1807_s18 = smov 0   ;;  %s1809_s19 = smov 0  }
   0x2   :  { %s1811_s20 = smov 0   ;;  %s1813_s21 = smov 0  }
   0x3 LB: > { %s1828_s22 = sadd.s32 4294967295, %s1769_s21   ;;  %s1481_s23 = sadd.s32 4294967294, %s1769_s21   ;;  %s1769_s21 = sphi %s1813_s21, %s2118_s21   ;;  %s1765_s20 = sphi %s1811_s20, %s2117_s20   ;;  %s1761_s19 = sphi %s1809_s19, %s2116_s19   ;;  %s1757_s18 = sphi %s1807_s18, %s2115_s18  }
   0x4   : > { %s1832_s24 = sadd.s32 1, %s1769_s21   ;;  %s135_s25 = sadd.s32 1, %s1765_s20 }
   0x5   : > { %s132_s26 = ssub.s32 %s1769_s21, %s1832_s24  ;;  %p145_p0 = scmp.ne.s32.totalorder %s1765_s20, %s1761_s19 }
   0x6   : > { %p133_p1 = scmp.eq.s32.totalorder %s132_s26, 0  ;;  %p146_p2 = scmp.eq.s32.totalorder %s1828_s22, 1 }
   0x7   : > { %p151_p3 = scmp.ne.s32.totalorder %s1761_s19, %s1757_s18  ;;  %p152_p4 = scmp.eq.s32.totalorder %s1481_s23, 1 }
   0x8   : > { %s1843_s27 = scalar_select %p133_p1, %s1765_s20, %s135_s25  }
   0x9   : > { %p1845_p5 = por %p146_p2, %p145_p0  ;;  %p1849_p6 = por %p152_p4, %p151_p3 }
   0xa   : > { %p1484_p7 = scmp.ge.s32.totalorder %s1769_s21, 1  ;;  %p189_p8 = scmp.lt.s32.totalorder %s1769_s21, 3 }
   0xc   : > { %p190_p9 = pnand %p1484_p7, %p189_p8 }
   0xd   : > { %p216_p10 = scmp.lt.s32.totalorder (!%p190_p9), %s1828_s22, 1  ;;  %s1773_s12 = smov (!%p190_p9), 96  }
   0xe   : > { %193 = sbr.rel (%p190_p9) target bundleno = 2473 (0x9a9), region = 40  ;;  %s1774_s13 = smov (!%p190_p9), 64  }
   0xf   : > { %s1775_s14 = smov (!%p190_p9), 32   ;;  %s1526_s10 = sshll.u32 (!%p190_p9), %s1828_s22, 7 }
  0x10   : > { %s1420_s23 = scalar_lea.hbm (!%p190_p9), %s2112_s5, %s1526_s10  ;;  %s1776_s30 = smov (!%p190_p9), [#allocation2]  }
  0x13   : > { %v234_v0 = vld [vmem:[%s2108_s1 + $0x38] sm:$0xff]  ;;  %v233_v1 = vld [vmem:[%s2108_s1 + $0x30] sm:$0xff]  ;;  %v232_v2 = vld [vmem:[%s2108_s1 + $0x28] sm:$0xff]  ;;  %v1771_v4 = vmov 0.0   ;;  %s217_s15 = scalar_select %p216_p10, %s1828_s22, 1  ;;  %vm247_vm0 = vcmask 261120   ;;  %v220_v10 = vlaneseq }
  0x14   : > { %275 = vmatprep.subr.mxu0 %v234_v0  ;;  %v231_v3 = vld [vmem:[%s2108_s1 + $0x20] sm:$0xff]  ;;  %315 = vmatprep.mubr.f32.mxu0 %v1771_v4  ;;  %v230_v5 = vld [vmem:[%s2108_s1 + $0x18] sm:$0xff]  ;;  %v229_v6 = vld [vmem:[%s2108_s1 + $0x10] sm:$0xff]  ;;  %vm1772_vm1 = vmmov 0   ;;  %vm409_vm3 = vcmask 64512   ;;  %s1713_s22 = sshll.u32 %s1776_s30, 4  ;;  %s1714_s22 = int_to_ptr.vmem [resolvable:$false] %s1713_s22 }
  0x15   : > { %276 = vmatpush1.msra.mxu0 %v233_v1  ;;  %1565 = vmatprep.subr.mxu1 %v1771_v4  ;;  %v228_v7 = vld [vmem:[%s2108_s1 + $0x8] sm:$0xff]  ;;  %s1486_s26 = sshll.u32 %s217_s15, 3  ;;  %v227_v8 = vld [vmem:[%s2108_s1] sm:$0xff]  ;;  %v1888_v11 = vshrl.u32 %v220_v10, 7  ;;  %v223_v24 = vand.u32 127, %v220_v10  ;;  %v329_v46 = vld [vmem:[%s2110_s3 + $0x38] sm:$0xff] }
  0x16   : > { %277 = vmatprep.subr.mxu0 %v232_v2  ;;  %s219_s9 = scalar_lea.vmem %s2107_s0, %s1486_s26  ;;  %1567 = vmatprep.mubr.msk.f32.mxu1 %vm1772_vm1, %v1771_v4  ;;  %v235_v13 = vld [vmem:[%s2109_s2] sm:$0x3]  ;;  %v325_v54 = vld [vmem:[%s2110_s3 + $0x18] sm:$0xff]  ;;  %v324_v55 = vld [vmem:[%s2110_s3 + $0x10] sm:$0xff]  ;;  %s1715_s6 = scalar_lea.vmem %s1714_s22, 256 }
  0x17   : > { %278 = vmatpush1.msra.mxu0 %v231_v3  ;;  %v226_v9 = vld [vmem:[%s219_s9] sm:$0xff]  ;;  %v239_v12 = vsub.s32 0, %v1888_v11  ;;  %v243_v17 = vsub.s32 1, %v1888_v11  ;;  %vm224_vm2 = vcmp.gt.s32.totalorder %v223_v24, %v1888_v11  ;;  %v323_v56 = vld [vmem:[%s2110_s3 + $0x8] sm:$0xff]  ;;  %v328_v57 = vld [vmem:[%s2110_s3 + $0x30] sm:$0xff] }
  0x18   : > { %279 = vmatprep.subr.mxu0 %v230_v5  ;;  %v1919_v26 = vsel %vm224_vm2, -1e+30, %v1771_v4  ;;  %v322_v58 = vld [vmem:[%s2110_s3] sm:$0xff]  ;;  %v327_v59 = vld [vmem:[%s2110_s3 + $0x28] sm:$0xff]  ;;  %v1504_v1 = vld [vmem:[%s2108_s1 + $0x78] sm:$0xff] }
  0x19   : > { %280 = vmatpush1.msra.mxu0 %v229_v6  ;;  %v240_v14 = vrot.slane %v235_v13, %v239_v12  ;;  %v244_v18 = vrot.slane %v235_v13, %v243_v17  ;;  %v326_v60 = vld [vmem:[%s2110_s3 + $0x20] sm:$0xff]  ;;  %v1503_v2 = vld [vmem:[%s2108_s1 + $0x70] sm:$0xff]  ;;  %v1502_v3 = vld [vmem:[%s2108_s1 + $0x68] sm:$0xff] }
  0x1a   : > { %281 = vmatprep.subr.mxu0 %v228_v7  ;;  %v1501_v5 = vld [vmem:[%s2108_s1 + $0x60] sm:$0xff]  ;;  %v1500_v6 = vld [vmem:[%s2108_s1 + $0x58] sm:$0xff]  ;;  %v1499_v7 = vld [vmem:[%s2108_s1 + $0x50] sm:$0xff] }
  0x1b   : > { %282 = vmatpush1.msra.mxu0 %v227_v8  ;;  %v1498_v8 = vld [vmem:[%s2108_s1 + $0x48] sm:$0xff] }
  0x1c   : > { %1487 = vmatmul.mubr.msk.f32.vlgmr.msra.gmra.mxu0 %vm247_vm0, %v226_v9  ;;  %1575 = vmatprep.subr.mxu0 %v1771_v4  ;;  %v1497_v9 = vld [vmem:[%s2108_s1 + $0x40] sm:$0xff] }
  0x1d   : > { %1577 = vmatprep.mubr.msk.f32.mxu0 %vm1772_vm1, %v1771_v4 }
  0xdc   : > { %v317_v15 = vpop.f32.mrf.mxu0 }
  0xdd   : > { %v318_v16 = vadd.f32 %v317_v15, %v240_v14  ;;  %v1496_v15 = vld [vmem:[%s2111_s4] ss:$0 sm:$0xff] }
  0xde   : > { %v319_v19 = vpop.f32.mrf.mxu0 }
  0xdf   : > { %494 = vrot.lane.b32.xlu1 %v318_v16, %s1773_s12  ;;  %331 = vrot.lane.b32.xlu0 %v318_v16, %s1774_s13  ;;  %v320_v21 = vadd.f32 %v319_v19, %v244_v18 }
  0xe3   : > { %496 = vrot.lane.b32.xlu0 %v318_v16, %s1775_s14 }
 0x151   : > { %v332_v20 = vpop.permute.xlu0 %331  ;;  %v495_v23 = vpop.permute.xlu1 %494 }
 0x152   : > { %1566 = vmatpush3.xpose.msk.msra.mxu1 %vm247_vm0, %v332_v20  ;;  %v1505_v20 = vld [vmem:[%s2109_s2 + $0x2] sm:$0x3] }
 0x153   : > { %1570 = vmatprep.subr.mxu1 %v1771_v4  ;;  %v835_v24 = vrot.slane %v1505_v20, %v243_v17 }
 0x155   : > { %1568 = vmatmul.mubr.msk.f32.vlgmr.msra.gmra.mxu1 %vm247_vm0, %v318_v16  ;;  %v497_v22 = vpop.permute.xlu0 %496 }
 0x156   : > { %1571 = vmatpush3.msra.mxu1 %v320_v21  ;;  %1576 = vmatpush3.xpose.msk.msra.mxu0 %vm247_vm0, %v497_v22 }
 0x157   : > { %1572 = vmatprep.mubr.msk.f32.mxu1 %vm1772_vm1, %v1771_v4  ;;  %1580 = vmatprep.subr.mxu1 %v1771_v4 }
 0x158   : > { %1585 = vmatprep.subr.mxu0 %v1771_v4 }
 0x159   : > { %1578 = vmatmul.mubr.msk.f32.vlgmr.msra.gmra.mxu0 %vm247_vm0, %v495_v23 }
 0x15a   : > { %1593 = vmatprep.mubr.msk.f32.mxu0 %vm1772_vm1, %v1771_v4  ;;  %1586 = vmatpush3.msra.mxu0 %v329_v46 }
 0x15b   : > { %1587 = vmatprep.subr.mxu0 %v1771_v4 }
 0x15c   : > { %1588 = vmatpush3.msra.mxu0 %v328_v57  ;;  %v1508_v57 = vld [vmem:[%s2110_s3 + $0x48] sm:$0xff] }
 0x15d   : > { %1589 = vmatprep.subr.mxu0 %v1771_v4 }
 0x15e   : > { %1590 = vmatpush3.msra.mxu0 %v327_v59  ;;  %v1507_v59 = vld [vmem:[%s2110_s3 + $0x40] sm:$0xff] }
 0x15f   : > { %1591 = vmatprep.subr.mxu0 %v1771_v4 }
 0x160   : > { %1592 = vmatpush3.msra.mxu0 %v326_v60  ;;  %v1512_v60 = vld [vmem:[%s2110_s3 + $0x68] sm:$0xff] }
 0x161   : > { %865 = vmatprep.subr.mxu0 %v1504_v1 }
 0x215   : > { %v403_v25 = vpop.f32.mrf.mxu1 }
 0x216   : > { %v407_v27 = vmul.f32 0.17677669, %v403_v25 }
 0x217   : > { %v1569_v28 = vpop.f32.mrf.mxu1 }
 0x218   : > { %v408_v29 = vadd.f32 %v407_v27, %v1919_v26 }
 0x219   : > { %v568_v30 = vpop.f32.mrf.mxu0 }
 0x21a   : > { %v572_v31 = vmul.f32 0.17677669, %v568_v30  ;;  %v410_v32 = vsel %vm409_vm3, %v408_v29, -inf }
 0x21b   : > { %411 = vmax.xlane.f32.xlu1 %v410_v32  ;;  %v1579_v33 = vpop.f32.mrf.mxu0 }
 0x21c   : > { %v573_v34 = vadd.f32 %v572_v31, %v1919_v26 }
 0x21e   : > { %v574_v35 = vsel %vm409_vm3, %v573_v34, -inf }
 0x21f   : > { %575 = vmax.xlane.f32.xlu0 %v574_v35 }
 0x2a4   : > { %v412_v36 = vpop.xlane.xlu1 %411 }
 0x2a5   : > { %v413_v37 = vsub.f32 %v408_v29, %v412_v36 }
 0x2a7   : > { %v414_v38 = vmul.f32 1.442695, %v413_v37 }
 0x2a8   : > { %v576_v39 = vpop.xlane.xlu0 %575 }
 0x2a9   : > { %1693 = vpow2.f32 %v414_v38  ;;  %v577_v40 = vsub.f32 %v573_v34, %v576_v39 }
 0x2ab   : > { %v578_v41 = vmul.f32 1.442695, %v577_v40 }
 0x2ad   : > { %1695 = vpow2.f32 %v578_v41 }
 0x2b6   : > { %v1694_v42 = vpop.eup %1693 }
 0x2b7   : > { %v416_v43 = vsel %vm409_vm3, %v1694_v42, 0.0 }
 0x2b8   : > { %417 = vadd.xlane.f32.xlu0 %v416_v43 }
 0x2ba   : > { %v1696_v44 = vpop.eup %1695 }
 0x2bb   : > { %v580_v45 = vsel %vm409_vm3, %v1696_v44, 0.0 }
 0x2bc   : > { %581 = vadd.xlane.f32.xlu1 %v580_v45 }
 0x2ce   : > { %586 = vrot.lane.b32.xlu0 %v320_v21, %s1773_s12  ;;  %v831_v21 = vrot.slane %v1505_v20, %v239_v12 }
 0x341   : > { %v418_v47 = vpop.xlane.xlu0 %417 }
 0x342   : > { %1697 = vrcp.f32 %v418_v47 }
 0x345   : > { %v582_v48 = vpop.xlane.xlu1 %581  ;;  %v587_v51 = vpop.permute.xlu0 %586 }
 0x346   : > { %1699 = vrcp.f32 %v582_v48 }
 0x34f   : > { %v1698_v49 = vpop.eup %1697 }
 0x350   : > { %v420_v50 = vmul.f32 %v1698_v49, %v1694_v42 }
 0x352   : > { %1573 = vmatmul.mubr.msk.f32.vlgmr.msra.gmra.mxu1 %vm409_vm3, %v420_v50 }
 0x353   : > { %v1700_v52 = vpop.eup %1699  ;;  %1581 = vmatpush3.msra.mxu1 %v587_v51  ;;  %1582 = vmatprep.mubr.msk.f32.mxu1 %vm1772_vm1, %v1771_v4 }
 0x354   : > { %v584_v53 = vmul.f32 %v1700_v52, %v1696_v44  ;;  %1596 = vmatprep.subr.mxu1 %v1771_v4 }
 0x356   : > { %1583 = vmatmul.mubr.msk.f32.vlgmr.msra.gmra.mxu1 %vm409_vm3, %v584_v53 }
 0x357   : > { %1597 = vmatpush3.msra.mxu1 %v325_v54  ;;  %1604 = vmatprep.mubr.msk.f32.mxu1 %vm1772_vm1, %v1771_v4 }
 0x358   : > { %1598 = vmatprep.subr.mxu1 %v1771_v4 }
 0x359   : > { %1599 = vmatpush3.msra.mxu1 %v324_v55  ;;  %v1510_v55 = vld [vmem:[%s2110_s3 + $0x58] sm:$0xff] }
 0x35a   : > { %1600 = vmatprep.subr.mxu1 %v1771_v4 }
 0x35b   : > { %1601 = vmatpush3.msra.mxu1 %v323_v56  ;;  %v1509_v56 = vld [vmem:[%s2110_s3 + $0x50] sm:$0xff] }
 0x35c   : > { %1602 = vmatprep.subr.mxu1 %v1771_v4 }
 0x35d   : > { %1603 = vmatpush3.msra.mxu1 %v322_v58  ;;  %v1513_v58 = vld [vmem:[%s2110_s3 + $0x70] sm:$0xff] }
 0x35e   : > { %1607 = vmatprep.subr.mxu1 %v1771_v4 }
 0x412   : > { %v490_v61 = vpop.f32.mrf.mxu1 }
 0x413   : > { %1605 = vmatmul.mubr.msk.f32.vlgmr.msra.gmra.mxu1 %vm247_vm0, %v490_v61  ;;  %v1511_v61 = vld [vmem:[%s2110_s3 + $0x60] sm:$0xff] }
 0x414   : > { %v1574_v62 = vpop.f32.mrf.mxu1  ;;  %1609 = vmatprep.mubr.msk.f32.mxu1 %vm1772_vm1, %v1771_v4 }
 0x416   : > { %v658_v63 = vpop.f32.mrf.mxu1 }
 0x417   : > { %1594 = vmatmul.mubr.msk.f32.vlgmr.msra.gmra.mxu0 %vm247_vm0, %v658_v63 }
 0x418   : > { %v1584_v0 = vpop.f32.mrf.mxu1  ;;  %905 = vmatprep.mubr.f32.mxu0 %v1771_v4  ;;  %866 = vmatpush1.msra.mxu0 %v1503_v2 }
 0x419   : > { %867 = vmatprep.subr.mxu0 %v1502_v3 }
 0x41a   : > { %868 = vmatpush1.msra.mxu0 %v1501_v5 }
 0x41b   : > { %869 = vmatprep.subr.mxu0 %v1500_v6 }
 0x41c   : > { %870 = vmatpush1.msra.mxu0 %v1499_v7 }
 0x41d   : > { %871 = vmatprep.subr.mxu0 %v1498_v8 }
 0x41e   : > { %872 = vmatpush1.msra.mxu0 %v1497_v9 }
 0x41f   : > { %1617 = vmatprep.subr.mxu0 %v1771_v4 }
 0x4d3   : > { %v804_v10 = vpop.f32.mrf.mxu1 }
 0x4d5   : > { %v1606_v13 = vpop.f32.mrf.mxu1 }
 0x4d7   : > { %v731_v14 = vpop.f32.mrf.mxu0 }
 0x4d8   : > { %v805_v16 = vadd.f32 %v804_v10, %v731_v14 }
 0x4d9   : > { %v1595_v18 = vpop.f32.mrf.mxu0 }
 0x4da   : > { %v815_v19 = vadd.f32 %v1496_v15, %v805_v16 }
 0x4dc   : > { %1506 = vmatmul.mubr.msk.f32.vlgmr.msra.gmra.mxu0 %vm247_vm0, %v815_v19 }
 0x4dd   : > { %1619 = vmatprep.mubr.msk.f32.mxu0 %vm1772_vm1, %v1771_v4 }
 0x59c   : > { %v907_v22 = vpop.f32.mrf.mxu0 }
 0x59d   : > { %v908_v23 = vadd.f32 %v907_v22, %v831_v21 }
 0x59e   : > { %v909_v25 = vpop.f32.mrf.mxu0 }
 0x59f   : > { %1084 = vrot.lane.b32.xlu0 %v908_v23, %s1773_s12  ;;  %922 = vrot.lane.b32.xlu1 %v908_v23, %s1774_s13  ;;  %v910_v28 = vadd.f32 %v909_v25, %v835_v24  ;;  %s213_s13 = sand.u32 1, %s1761_s19  }
 0x5a0   : > { %s1409_s25 = scalar_lea.sflag [#allocation3], %s213_s13 }
 0x5a3   : > { %1086 = vrot.lane.b32.xlu1 %v908_v23, %s1775_s14  ;;  %s1485_s14 = sshll.u32 %s213_s13, 3 }
 0x5a4   : > { %s215_s11 = scalar_lea.vmem [#allocation2], %s1485_s14 }
 0x5a5   : > { %s1422_s15 = sshll.u32 %s215_s11, 4  ;;  %s1423_s15 = int_to_ptr.vmem [resolvable:$true] %s1422_s15 }
 0x5a6   : > { %s1709_s26 = scalar_lea.vmem %s1423_s15, 128  ;;  %p1716_p0 = scmp.lt.s32.totalorder %s1423_s15, %s1714_s22 }
 0x5a7   : > { %p1710_p11 = scmp.ne.s32.totalorder %s1423_s15, %s1709_s26  ;;  %p1717_p1 = scmp.lt.s32.totalorder %s1715_s6, %s1709_s26 }
 0x5a9   : > { %p1711_p12 = pnand %p1710_p11, %p1845_p5  ;;  %p1718_p2 = por %p1717_p1, %p1716_p0 }
 0x5ab   : > { %p1712_p13 = pneg %p1711_p12 }
 0x5ad   : > { %p1719_p3 = pnand %p1718_p2, %p1712_p13 }
 0x611   : > { %v923_v27 = vpop.permute.xlu1 %922  ;;  %v1085_v11 = vpop.permute.xlu0 %1084 }
 0x612   : > { %1608 = vmatpush3.xpose.msk.msra.mxu1 %vm247_vm0, %v923_v27 }
 0x613   : > { %1612 = vmatprep.subr.mxu1 %v1771_v4 }
 0x615   : > { %1610 = vmatmul.mubr.msk.f32.vlgmr.msra.gmra.mxu1 %vm247_vm0, %v908_v23  ;;  %v1087_v12 = vpop.permute.xlu1 %1086 }
 0x616   : > { %1613 = vmatpush3.msra.mxu1 %v910_v28  ;;  %1618 = vmatpush3.xpose.msk.msra.mxu0 %vm247_vm0, %v1087_v12 }
 0x617   : > { %1614 = vmatprep.mubr.msk.f32.mxu1 %vm1772_vm1, %v1771_v4  ;;  %1622 = vmatprep.subr.mxu1 %v1771_v4 }
 0x618   : > { %1627 = vmatprep.subr.mxu0 %v1771_v4 }
 0x619   : > { %1620 = vmatmul.mubr.msk.f32.vlgmr.msra.gmra.mxu0 %vm247_vm0, %v1085_v11 }
 0x61a   : > { %1635 = vmatprep.mubr.msk.f32.mxu0 %vm1772_vm1, %v1771_v4 }
 0x6d5   : > { %v994_v17 = vpop.f32.mrf.mxu1 }
 0x6d6   : > { %v998_v29 = vmul.f32 0.17677669, %v994_v17 }
 0x6d7   : > { %v1611_v30 = vpop.f32.mrf.mxu1 }
 0x6d8   : > { %v999_v31 = vadd.f32 %v998_v29, %v1919_v26 }
 0x6d9   : > { %v1158_v32 = vpop.f32.mrf.mxu0 }
 0x6da   : > { %v1162_v33 = vmul.f32 0.17677669, %v1158_v32  ;;  %v1000_v34 = vsel %vm409_vm3, %v999_v31, -inf }
 0x6db   : > { %1001 = vmax.xlane.f32.xlu1 %v1000_v34  ;;  %v1621_v35 = vpop.f32.mrf.mxu0 }
 0x6dc   : > { %v1163_v36 = vadd.f32 %v1162_v33, %v1919_v26  ;;  %v1514_v26 = vld [vmem:[%s2110_s3 + $0x78] sm:$0xff] }
 0x6dd   : > { %1628 = vmatpush3.msra.mxu0 %v1514_v26 }
 0x6de   : > { %v1164_v37 = vsel %vm409_vm3, %v1163_v36, -inf  ;;  %1629 = vmatprep.subr.mxu0 %v1771_v4 }
 0x6df   : > { %1165 = vmax.xlane.f32.xlu0 %v1164_v37  ;;  %1630 = vmatpush3.msra.mxu0 %v1513_v58 }
 0x6e0   : > { %1631 = vmatprep.subr.mxu0 %v1771_v4 }
 0x6e1   : > { %1632 = vmatpush3.msra.mxu0 %v1512_v60 }
 0x6e2   : > { %1633 = vmatprep.subr.mxu0 %v1771_v4 }
 0x6e3   : > { %1634 = vmatpush3.msra.mxu0 %v1511_v61 }
 0x764   : > { %v1002_v38 = vpop.xlane.xlu1 %1001 }
 0x765   : > { %v1003_v39 = vsub.f32 %v999_v31, %v1002_v38 }
 0x767   : > { %v1004_v40 = vmul.f32 1.442695, %v1003_v39 }
 0x768   : > { %v1166_v41 = vpop.xlane.xlu0 %1165 }
 0x769   : > { %1701 = vpow2.f32 %v1004_v40  ;;  %v1167_v42 = vsub.f32 %v1163_v36, %v1166_v41 }
 0x76b   : > { %v1168_v43 = vmul.f32 1.442695, %v1167_v42 }
 0x76d   : > { %1703 = vpow2.f32 %v1168_v43 }
 0x776   : > { %v1702_v44 = vpop.eup %1701 }
 0x777   : > { %v1006_v45 = vsel %vm409_vm3, %v1702_v44, 0.0 }
 0x778   : > { %1007 = vadd.xlane.f32.xlu0 %v1006_v45 }
 0x77a   : > { %v1704_v46 = vpop.eup %1703 }
 0x77b   : > { %v1170_v47 = vsel %vm409_vm3, %v1704_v46, 0.0 }
 0x77c   : > { %1171 = vadd.xlane.f32.xlu1 %v1170_v47 }
 0x78e   : > { %1176 = vrot.lane.b32.xlu0 %v910_v28, %s1773_s12 }
 0x801   : > { %v1008_v48 = vpop.xlane.xlu0 %1007 }
 0x802   : > { %1705 = vrcp.f32 %v1008_v48 }
 0x805   : > { %v1172_v49 = vpop.xlane.xlu1 %1171  ;;  %v1177_v52 = vpop.permute.xlu0 %1176 }
 0x806   : > { %1707 = vrcp.f32 %v1172_v49 }
 0x80f   : > { %v1706_v50 = vpop.eup %1705 }
 0x810   : > { %v1010_v51 = vmul.f32 %v1706_v50, %v1702_v44 }
 0x812   : > { %1615 = vmatmul.mubr.msk.f32.vlgmr.msra.gmra.mxu1 %vm409_vm3, %v1010_v51 }
 0x813   : > { %v1708_v53 = vpop.eup %1707  ;;  %1623 = vmatpush3.msra.mxu1 %v1177_v52  ;;  %1624 = vmatprep.mubr.msk.f32.mxu1 %vm1772_vm1, %v1771_v4 }
 0x814   : > { %v1174_v54 = vmul.f32 %v1708_v53, %v1704_v46  ;;  %1638 = vmatprep.subr.mxu1 %v1771_v4 }
 0x816   : > { %1625 = vmatmul.mubr.msk.f32.vlgmr.msra.gmra.mxu1 %vm409_vm3, %v1174_v54 }
 0x817   : > { %1639 = vmatpush3.msra.mxu1 %v1510_v55  ;;  %1646 = vmatprep.mubr.msk.f32.mxu1 %vm1772_vm1, %v1771_v4 }
 0x818   : > { %1640 = vmatprep.subr.mxu1 %v1771_v4 }
 0x819   : > { %1641 = vmatpush3.msra.mxu1 %v1509_v56 }
 0x81a   : > { %1642 = vmatprep.subr.mxu1 %v1771_v4 }
 0x81b   : > { %1643 = vmatpush3.msra.mxu1 %v1508_v57 }
 0x81c   : > { %1644 = vmatprep.subr.mxu1 %v1771_v4  ;;  %v1524_v4 = vld [vmem:[%s2111_s4 + $0x1] ss:$0 sm:$0xff] }
 0x81d   : > { %1645 = vmatpush3.msra.mxu1 %v1507_v59 }
 0x8d2   : > { %v1080_v62 = vpop.f32.mrf.mxu1 }
 0x8d3   : > { %1647 = vmatmul.mubr.msk.f32.vlgmr.msra.gmra.mxu1 %vm247_vm0, %v1080_v62 }
 0x8d4   : > { %v1616_v63 = vpop.f32.mrf.mxu1 }
 0x8d6   : > { %v1248_v0 = vpop.f32.mrf.mxu1 }
 0x8d7   : > { %1636 = vmatmul.mubr.msk.f32.vlgmr.msra.gmra.mxu0 %vm247_vm0, %v1248_v0 }
 0x8d8   : > { %v1626_v1 = vpop.f32.mrf.mxu1 }
 0x993   : > { %v1394_v2 = vpop.f32.mrf.mxu1 }
 0x995   : > { %v1648_v3 = vpop.f32.mrf.mxu1 }
 0x997   : > { %v1321_v5 = vpop.f32.mrf.mxu0 }
 0x998   : > { %v1395_v6 = vadd.f32 %v1394_v2, %v1321_v5 }
 0x999   : > { %v1637_v7 = vpop.f32.mrf.mxu0 }
 0x99a   : > { %v1406_v8 = vadd.f32 %v1524_v4, %v1395_v6 }
 0x99c   : > { %1407 = vst.msk [vmem:[%s215_s11] sm:$0xff] %vm247_vm0, %v1406_v8 }
 0x99d   : > { %1722 = shalt.err (!%p1719_p3)
}
 0x99e   : > { %s1723_s7 = scalar_lea.hbm %s1420_s23, 128  ;;  %s1727_s14 = scalar_lea.hbm %s2112_s5, 256 }
 0x99f   : > { %p1724_p4 = scmp.ne.s32.totalorder %s1420_s23, %s1723_s7  ;;  %p1728_p9 = scmp.lt.s32.totalorder %s1420_s23, %s2112_s5 }
 0x9a0   : > { %p1729_p10 = scmp.lt.s32.totalorder %s1727_s14, %s1723_s7 }
 0x9a1   : > { %p1725_p7 = pnand %p1724_p4, %p1845_p5 }
 0x9a2   : > { %p1730_p11 = por %p1729_p10, %p1728_p9 }
 0x9a3   : > { %p1726_p8 = pneg %p1725_p7 }
 0x9a5   : > { %p1731_p12 = pnand %p1730_p11, %p1726_p8 }
 0x9a7   : > { %1734 = shalt.err (!%p1731_p12)
}
 0x9a8   : > { %1649 = dma.vmem_to_hbm [thread:$0]  (%p1845_p5), %s1423_s15, 128, %s1420_s23, %s1409_s25  }
 0x9a9 PF: > { %p1655_p13 = scmp.ge.s32.totalorder %s1769_s21, 2  ;;  %s1434_s10 = sand.u32 1, %s1757_s18  }
 0x9aa   : > { %s1435_s11 = scalar_lea.sflag [#allocation3], %s1434_s10 }
 0x9ab   : > { %p1652_p0 = pnand %p1655_p13, %p1849_p6 }
 0x9ad   : > { %p1653_p1 = pneg %p1652_p0 }
 0x9af   : > { %1752 = dma.done.wait (%p1653_p1), %s1435_s11, 128  }
 0x9b0   : > { %1754 = vsyncadd (%p1653_p1), %s1435_s11, 4294967168  ;;  %p15_p2 = scmp.ge.s32.totalorder %s1832_s24, 4   ;;  %s2115_s18 = smov %s1761_s19 }
 0x9b1   : > { %s2116_s19 = smov %s1765_s20  ;;  %s2117_s20 = smov %s1843_s27 }
 0x9b2   : > { %s2118_s21 = smov %s1832_s24  ;;  %17 = sbr.rel (!%p15_p2) target bundleno = 3 (0x3), region = 79 }
 0x9b7   :  { %1440 = vsyncpa [#allocation3], 1 }
 0x9b8   :  { %1442 = vsyncpa [#allocation3 + $0x1], 1 }

</bundles_post_ra>
